<compile_context>
chip_gen: v7x
topology: tpu7x:2x2x1
jax: 0.10.0
libtpu: 0.0.40
codegen_flags: <defaults>
</compile_context>

<pallas_src>
import functools

import jax
import jax.numpy as jnp
from jax import lax
from jax.experimental import pallas as pl
from jax.experimental.pallas import tpu as pltpu


def _attention_kernel(x_ref, wqkv_ref, wproj_ref, bproj_ref, o_ref, *, num_heads):
    """block_b batch elements per grid step: fused qkv -> attention -> proj."""
    bt, N, C = x_ref.shape
    d = C // num_heads

    # ---- QKV projection: ONE lane/sublane-dense (bt*N, C) @ (C, 3C) MXU matmul.
    #      The softmax scale is pre-folded into the q-columns of w_qkv (wrapper).
    x = x_ref[...].reshape(bt * N, C).astype(jnp.bfloat16)
    qkv = jnp.dot(x, wqkv_ref[...], preferred_element_type=jnp.float32)
    qkv = qkv.astype(jnp.bfloat16)                                   # (bt*N, 3C)

    # ---- scaled dot-product attention ---------------------------------------
    # Per-head contexts stay in registers and are concatenated ONCE into a
    # lane-dense (rows, C) value: no VMEM ctx scratch, no masked vst.msk
    # lane-stripe stores, no extra VMEM round-trip before the proj matmul.
    ctx_rows = []
    for b in range(bt):                          # static unroll; bt is small
        r = slice(b * N, (b + 1) * N)
        q, k, v = qkv[r, 0:C], qkv[r, C:2 * C], qkv[r, 2 * C:3 * C]  # (N, C) bf16
        head_ctx = []
        for h in range(num_heads):               # static unroll over heads
            c = slice(h * d, (h + 1) * d)
            qh, kh, vh = q[:, c], k[:, c], v[:, c]                   # (N, d) bf16
            # Contract on d for BOTH operands (no explicit k transpose).
            s = lax.dot_general(qh, kh, (((1,), (1,)), ((), ())),
                                preferred_element_type=jnp.float32)  # (N, N) f32
            s = s - jnp.max(s, axis=-1, keepdims=True)               # stable softmax
            p = jnp.exp(s)
            p = p * pl.reciprocal(jnp.sum(p, axis=-1, keepdims=True), approx=True)
            head_ctx.append(jnp.dot(p.astype(jnp.bfloat16), vh,
                                    preferred_element_type=jnp.float32))
        ctx_rows.append(jnp.concatenate(head_ctx, axis=-1))          # (N, C) f32

    ctx = jnp.concatenate(ctx_rows, axis=0)                          # (bt*N, C)

    # ---- output projection: ONE (bt*N, C) @ (C, C) matmul + bias, dense store.
    y = jnp.dot(ctx.astype(jnp.bfloat16), wproj_ref[...],
                preferred_element_type=jnp.float32)
    y = y + bproj_ref[...]
    o_ref[...] = y.reshape(bt, N, C).astype(o_ref.dtype)


def attention(x, params, *, num_heads, block_b=None):
    """x: (B, N, C) -> (B, N, C); matches torch Attention.forward (dropout p=0)."""
    B, N, C = x.shape
    assert C % num_heads == 0
    scale = (C // num_heads) ** -0.5

    if block_b is None:
        # Amortize per-step pipeline overhead while keeping >= 2 "parallel"
        # grid steps so both v7x TensorCores get work (near-free on v5e/v6e).
        block_b = max(1, B // 2)
        while B % block_b:                       # keep it a divisor of B
            block_b -= 1
    assert B % block_b == 0

    # Fold the softmax scale into the q-columns of w_qkv (free, exact since
    # qkv_bias=False) and cast weights to bf16 once: the MXU is bf16-native on
    # v5e/v6e/v7x and this halves resident-weight VMEM.
    w_qkv = params["w_qkv"].at[:, :C].multiply(scale).astype(jnp.bfloat16)
    w_proj = params["w_proj"].astype(jnp.bfloat16)
    b_proj = params["b_proj"].astype(jnp.float32)    # added post-accumulation

    kernel = functools.partial(_attention_kernel, num_heads=num_heads)
    return pl.pallas_call(
        kernel,
        out_shape=jax.ShapeDtypeStruct((B, N, C), x.dtype),
        grid_spec=pltpu.PrefetchScalarGridSpec(
            num_scalar_prefetch=0,
            grid=(B // block_b,),
            in_specs=[
                pl.BlockSpec((block_b, N, C), lambda b: (b, 0, 0)),  # x tile
                pl.BlockSpec((C, 3 * C), lambda b: (0, 0)),          # w_qkv (resident)
                pl.BlockSpec((C, C), lambda b: (0, 0)),              # w_proj (resident)
                pl.BlockSpec((1, C), lambda b: (0, 0)),              # b_proj (resident)
            ],
            out_specs=pl.BlockSpec((block_b, N, C), lambda b: (b, 0, 0)),
        ),
        compiler_params=pltpu.CompilerParams(
            dimension_semantics=("parallel",)),
    )(x, w_qkv, w_proj, b_proj)


def init_params(key, dim, *, std=0.1):
    """Deterministic synthetic Linear weights, pre-transposed to (in, out).

    qkv_bias=False (module default) -> no qkv bias; proj keeps its bias.
    """
    k1, k2, k3 = jax.random.split(key, 3)
    return dict(
        w_qkv=std * jax.random.normal(k1, (dim, 3 * dim), jnp.float32),
        w_proj=std * jax.random.normal(k2, (dim, dim), jnp.float32),
        b_proj=std * jax.random.normal(k3, (1, dim), jnp.float32),
    )


def ref_forward(x, params, *, num_heads):
    """Pure-JAX (f32) reference mirroring the PyTorch module (dropout p=0)."""
    B, N, C = x.shape
    d = C // num_heads
    scale = d ** -0.5
    qkv = x @ params["w_qkv"]                                        # (B, N, 3C)
    qkv = qkv.reshape(B, N, 3, num_heads, d).transpose(2, 0, 3, 1, 4)
    q, k, v = qkv[0], qkv[1], qkv[2]                                 # (B, H, N, d)
    attn = jnp.einsum("bhnd,bhmd->bhnm", q, k) * scale
    attn = jax.nn.softmax(attn, axis=-1)
    out = jnp.einsum("bhnm,bhmd->bhnd", attn, v)
    out = out.transpose(0, 2, 1, 3).reshape(B, N, C)
    return out @ params["w_proj"] + params["b_proj"]


if __name__ == "__main__":
    key = jax.random.PRNGKey(0)
    kx, kp = jax.random.split(key)

    B, N, C, num_heads = 2, 8, 32, 8          # head_dim = 4
    x = jax.random.normal(kx, (B, N, C), jnp.float32)
    params = init_params(kp, C)

    y = attention(x, params, num_heads=num_heads)
    jax.block_until_ready(y)

    y_ref = ref_forward(x, params, num_heads=num_heads)
    assert y.shape == (B, N, C)
    # bf16 MXU operands + EUP approx reciprocal -> relaxed tolerance vs f32 ref.
    assert jnp.allclose(y, y_ref, rtol=5e-2, atol=5e-2), "mismatch vs JAX reference"

    print("KERNEL_OK")
</pallas_src>

<mosaic_0001>
module attributes {stable_mosaic.version = 11 : i64} {
  func.func @_attention_kernel(%arg0: i32, %arg1: memref<1x8x32xf32, #tpu.memory_space<vmem>>, %arg2: memref<32x96xbf16, #tpu.memory_space<vmem>>, %arg3: memref<32x32xbf16, #tpu.memory_space<vmem>>, %arg4: memref<1x32xf32, #tpu.memory_space<vmem>>, %arg5: memref<1x8x32xf32, #tpu.memory_space<vmem>>) attributes {dimension_semantics = [#tpu.dimension_semantics<parallel>], iteration_bounds = array<i64: 2>, scalar_prefetch = 0 : i64, scratch_operands = 0 : i64, tpu.core_type = #tpu.core_type<tc>, window_params = [{transform_indices = @transform_0, window_bounds = array<i64: 1, 8, 32>}, {pipeline_mode = #tpu.pipeline_mode<synchronous>, transform_indices = @transform_1, window_bounds = array<i64: 32, 96>}, {pipeline_mode = #tpu.pipeline_mode<synchronous>, transform_indices = @transform_2, window_bounds = array<i64: 32, 32>}, {pipeline_mode = #tpu.pipeline_mode<synchronous>, transform_indices = @transform_3, window_bounds = array<i64: 1, 32>}, {transform_indices = @transform_4, window_bounds = array<i64: 1, 8, 32>}]} {
    %c0 = arith.constant 0 : index
    %c0_0 = arith.constant 0 : index
    %c0_1 = arith.constant 0 : index
    %0 = vector.load %arg1[%c0, %c0_0, %c0_1] : memref<1x8x32xf32, #tpu.memory_space<vmem>>, vector<1x8x32xf32>
    %1 = vector.shape_cast %0 : vector<1x8x32xf32> to vector<8x32xf32>
    %2 = arith.truncf %1 : vector<8x32xf32> to vector<8x32xbf16>
    %c0_2 = arith.constant 0 : index
    %c0_3 = arith.constant 0 : index
    %3 = vector.load %arg2[%c0_2, %c0_3] : memref<32x96xbf16, #tpu.memory_space<vmem>>, vector<32x96xbf16>
    %cst = arith.constant dense<0.000000e+00> : vector<8x96xf32>
    %4 = tpu.matmul %2, %3, %cst {dimension_numbers = #tpu.dot_dimension_numbers<[1], [0], [0], [1], [0, 0, 1, 1], [], []>} : vector<8x32xbf16>, vector<32x96xbf16>, vector<8x96xf32> -> vector<8x96xf32>
    %5 = arith.truncf %4 : vector<8x96xf32> to vector<8x96xbf16>
    %6 = vector.extract_strided_slice %5 {offsets = [0, 0], sizes = [8, 32], strides = [1, 1]} : vector<8x96xbf16> to vector<8x32xbf16>
    %7 = vector.extract_strided_slice %5 {offsets = [0, 32], sizes = [8, 32], strides = [1, 1]} : vector<8x96xbf16> to vector<8x32xbf16>
    %8 = vector.extract_strided_slice %5 {offsets = [0, 64], sizes = [8, 32], strides = [1, 1]} : vector<8x96xbf16> to vector<8x32xbf16>
    %9 = vector.extract_strided_slice %6 {offsets = [0, 0], sizes = [8, 4], strides = [1, 1]} : vector<8x32xbf16> to vector<8x4xbf16>
    %10 = vector.extract_strided_slice %7 {offsets = [0, 0], sizes = [8, 4], strides = [1, 1]} : vector<8x32xbf16> to vector<8x4xbf16>
    %11 = vector.extract_strided_slice %8 {offsets = [0, 0], sizes = [8, 4], strides = [1, 1]} : vector<8x32xbf16> to vector<8x4xbf16>
    %cst_4 = arith.constant dense<0.000000e+00> : vector<8x8xf32>
    %12 = tpu.matmul %9, %10, %cst_4 {dimension_numbers = #tpu.dot_dimension_numbers<[1], [1], [0], [0], [0, 0, 1, 0], [], []>} : vector<8x4xbf16>, vector<8x4xbf16>, vector<8x8xf32> -> vector<8x8xf32>
    %cst_5 = arith.constant dense<0xFF800000> : vector<8xf32>
    %13 = vector.multi_reduction <maximumf>, %12, %cst_5 [1] : vector<8x8xf32> to vector<8xf32>
    %14 = vector.shape_cast %13 : vector<8xf32> to vector<8x1xf32>
    %15 = vector.broadcast %14 : vector<8x1xf32> to vector<8x8xf32>
    %16 = arith.subf %12, %15 : vector<8x8xf32>
    %17 = math.exp %16 : vector<8x8xf32>
    %cst_6 = arith.constant dense<0.000000e+00> : vector<8xf32>
    %18 = vector.multi_reduction <add>, %17, %cst_6 [1] : vector<8x8xf32> to vector<8xf32>
    %19 = vector.shape_cast %18 : vector<8xf32> to vector<8x1xf32>
    %20 = tpu.reciprocal %19 {approx = true} : vector<8x1xf32> -> vector<8x1xf32>
    %21 = vector.broadcast %20 : vector<8x1xf32> to vector<8x8xf32>
    %22 = arith.mulf %17, %21 : vector<8x8xf32>
    %23 = arith.truncf %22 : vector<8x8xf32> to vector<8x8xbf16>
    %cst_7 = arith.constant dense<0.000000e+00> : vector<8x4xf32>
    %24 = tpu.matmul %23, %11, %cst_7 {dimension_numbers = #tpu.dot_dimension_numbers<[1], [0], [0], [1], [0, 0, 1, 1], [], []>} : vector<8x8xbf16>, vector<8x4xbf16>, vector<8x4xf32> -> vector<8x4xf32>
    %25 = vector.extract_strided_slice %6 {offsets = [0, 4], sizes = [8, 4], strides = [1, 1]} : vector<8x32xbf16> to vector<8x4xbf16>
    %26 = vector.extract_strided_slice %7 {offsets = [0, 4], sizes = [8, 4], strides = [1, 1]} : vector<8x32xbf16> to vector<8x4xbf16>
    %27 = vector.extract_strided_slice %8 {offsets = [0, 4], sizes = [8, 4], strides = [1, 1]} : vector<8x32xbf16> to vector<8x4xbf16>
    %cst_8 = arith.constant dense<0.000000e+00> : vector<8x8xf32>
    %28 = tpu.matmul %25, %26, %cst_8 {dimension_numbers = #tpu.dot_dimension_numbers<[1], [1], [0], [0], [0, 0, 1, 0], [], []>} : vector<8x4xbf16>, vector<8x4xbf16>, vector<8x8xf32> -> vector<8x8xf32>
    %cst_9 = arith.constant dense<0xFF800000> : vector<8xf32>
    %29 = vector.multi_reduction <maximumf>, %28, %cst_9 [1] : vector<8x8xf32> to vector<8xf32>
    %30 = vector.shape_cast %29 : vector<8xf32> to vector<8x1xf32>
    %31 = vector.broadcast %30 : vector<8x1xf32> to vector<8x8xf32>
    %32 = arith.subf %28, %31 : vector<8x8xf32>
    %33 = math.exp %32 : vector<8x8xf32>
    %cst_10 = arith.constant dense<0.000000e+00> : vector<8xf32>
    %34 = vector.multi_reduction <add>, %33, %cst_10 [1] : vector<8x8xf32> to vector<8xf32>
    %35 = vector.shape_cast %34 : vector<8xf32> to vector<8x1xf32>
    %36 = tpu.reciprocal %35 {approx = true} : vector<8x1xf32> -> vector<8x1xf32>
    %37 = vector.broadcast %36 : vector<8x1xf32> to vector<8x8xf32>
    %38 = arith.mulf %33, %37 : vector<8x8xf32>
    %39 = arith.truncf %38 : vector<8x8xf32> to vector<8x8xbf16>
    %cst_11 = arith.constant dense<0.000000e+00> : vector<8x4xf32>
    %40 = tpu.matmul %39, %27, %cst_11 {dimension_numbers = #tpu.dot_dimension_numbers<[1], [0], [0], [1], [0, 0, 1, 1], [], []>} : vector<8x8xbf16>, vector<8x4xbf16>, vector<8x4xf32> -> vector<8x4xf32>
    %41 = vector.extract_strided_slice %6 {offsets = [0, 8], sizes = [8, 4], strides = [1, 1]} : vector<8x32xbf16> to vector<8x4xbf16>
    %42 = vector.extract_strided_slice %7 {offsets = [0, 8], sizes = [8, 4], strides = [1, 1]} : vector<8x32xbf16> to vector<8x4xbf16>
    %43 = vector.extract_strided_slice %8 {offsets = [0, 8], sizes = [8, 4], strides = [1, 1]} : vector<8x32xbf16> to vector<8x4xbf16>
    %cst_12 = arith.constant dense<0.000000e+00> : vector<8x8xf32>
    %44 = tpu.matmul %41, %42, %cst_12 {dimension_numbers = #tpu.dot_dimension_numbers<[1], [1], [0], [0], [0, 0, 1, 0], [], []>} : vector<8x4xbf16>, vector<8x4xbf16>, vector<8x8xf32> -> vector<8x8xf32>
    %cst_13 = arith.constant dense<0xFF800000> : vector<8xf32>
    %45 = vector.multi_reduction <maximumf>, %44, %cst_13 [1] : vector<8x8xf32> to vector<8xf32>
    %46 = vector.shape_cast %45 : vector<8xf32> to vector<8x1xf32>
    %47 = vector.broadcast %46 : vector<8x1xf32> to vector<8x8xf32>
    %48 = arith.subf %44, %47 : vector<8x8xf32>
    %49 = math.exp %48 : vector<8x8xf32>
    %cst_14 = arith.constant dense<0.000000e+00> : vector<8xf32>
    %50 = vector.multi_reduction <add>, %49, %cst_14 [1] : vector<8x8xf32> to vector<8xf32>
    %51 = vector.shape_cast %50 : vector<8xf32> to vector<8x1xf32>
    %52 = tpu.reciprocal %51 {approx = true} : vector<8x1xf32> -> vector<8x1xf32>
    %53 = vector.broadcast %52 : vector<8x1xf32> to vector<8x8xf32>
    %54 = arith.mulf %49, %53 : vector<8x8xf32>
    %55 = arith.truncf %54 : vector<8x8xf32> to vector<8x8xbf16>
    %cst_15 = arith.constant dense<0.000000e+00> : vector<8x4xf32>
    %56 = tpu.matmul %55, %43, %cst_15 {dimension_numbers = #tpu.dot_dimension_numbers<[1], [0], [0], [1], [0, 0, 1, 1], [], []>} : vector<8x8xbf16>, vector<8x4xbf16>, vector<8x4xf32> -> vector<8x4xf32>
    %57 = vector.extract_strided_slice %6 {offsets = [0, 12], sizes = [8, 4], strides = [1, 1]} : vector<8x32xbf16> to vector<8x4xbf16>
    %58 = vector.extract_strided_slice %7 {offsets = [0, 12], sizes = [8, 4], strides = [1, 1]} : vector<8x32xbf16> to vector<8x4xbf16>
    %59 = vector.extract_strided_slice %8 {offsets = [0, 12], sizes = [8, 4], strides = [1, 1]} : vector<8x32xbf16> to vector<8x4xbf16>
    %cst_16 = arith.constant dense<0.000000e+00> : vector<8x8xf32>
    %60 = tpu.matmul %57, %58, %cst_16 {dimension_numbers = #tpu.dot_dimension_numbers<[1], [1], [0], [0], [0, 0, 1, 0], [], []>} : vector<8x4xbf16>, vector<8x4xbf16>, vector<8x8xf32> -> vector<8x8xf32>
    %cst_17 = arith.constant dense<0xFF800000> : vector<8xf32>
    %61 = vector.multi_reduction <maximumf>, %60, %cst_17 [1] : vector<8x8xf32> to vector<8xf32>
    %62 = vector.shape_cast %61 : vector<8xf32> to vector<8x1xf32>
    %63 = vector.broadcast %62 : vector<8x1xf32> to vector<8x8xf32>
    %64 = arith.subf %60, %63 : vector<8x8xf32>
    %65 = math.exp %64 : vector<8x8xf32>
    %cst_18 = arith.constant dense<0.000000e+00> : vector<8xf32>
    %66 = vector.multi_reduction <add>, %65, %cst_18 [1] : vector<8x8xf32> to vector<8xf32>
    %67 = vector.shape_cast %66 : vector<8xf32> to vector<8x1xf32>
    %68 = tpu.reciprocal %67 {approx = true} : vector<8x1xf32> -> vector<8x1xf32>
    %69 = vector.broadcast %68 : vector<8x1xf32> to vector<8x8xf32>
    %70 = arith.mulf %65, %69 : vector<8x8xf32>
    %71 = arith.truncf %70 : vector<8x8xf32> to vector<8x8xbf16>
    %cst_19 = arith.constant dense<0.000000e+00> : vector<8x4xf32>
    %72 = tpu.matmul %71, %59, %cst_19 {dimension_numbers = #tpu.dot_dimension_numbers<[1], [0], [0], [1], [0, 0, 1, 1], [], []>} : vector<8x8xbf16>, vector<8x4xbf16>, vector<8x4xf32> -> vector<8x4xf32>
    %73 = vector.extract_strided_slice %6 {offsets = [0, 16], sizes = [8, 4], strides = [1, 1]} : vector<8x32xbf16> to vector<8x4xbf16>
    %74 = vector.extract_strided_slice %7 {offsets = [0, 16], sizes = [8, 4], strides = [1, 1]} : vector<8x32xbf16> to vector<8x4xbf16>
    %75 = vector.extract_strided_slice %8 {offsets = [0, 16], sizes = [8, 4], strides = [1, 1]} : vector<8x32xbf16> to vector<8x4xbf16>
    %cst_20 = arith.constant dense<0.000000e+00> : vector<8x8xf32>
    %76 = tpu.matmul %73, %74, %cst_20 {dimension_numbers = #tpu.dot_dimension_numbers<[1], [1], [0], [0], [0, 0, 1, 0], [], []>} : vector<8x4xbf16>, vector<8x4xbf16>, vector<8x8xf32> -> vector<8x8xf32>
    %cst_21 = arith.constant dense<0xFF800000> : vector<8xf32>
    %77 = vector.multi_reduction <maximumf>, %76, %cst_21 [1] : vector<8x8xf32> to vector<8xf32>
    %78 = vector.shape_cast %77 : vector<8xf32> to vector<8x1xf32>
    %79 = vector.broadcast %78 : vector<8x1xf32> to vector<8x8xf32>
    %80 = arith.subf %76, %79 : vector<8x8xf32>
    %81 = math.exp %80 : vector<8x8xf32>
    %cst_22 = arith.constant dense<0.000000e+00> : vector<8xf32>
    %82 = vector.multi_reduction <add>, %81, %cst_22 [1] : vector<8x8xf32> to vector<8xf32>
    %83 = vector.shape_cast %82 : vector<8xf32> to vector<8x1xf32>
    %84 = tpu.reciprocal %83 {approx = true} : vector<8x1xf32> -> vector<8x1xf32>
    %85 = vector.broadcast %84 : vector<8x1xf32> to vector<8x8xf32>
    %86 = arith.mulf %81, %85 : vector<8x8xf32>
    %87 = arith.truncf %86 : vector<8x8xf32> to vector<8x8xbf16>
    %cst_23 = arith.constant dense<0.000000e+00> : vector<8x4xf32>
    %88 = tpu.matmul %87, %75, %cst_23 {dimension_numbers = #tpu.dot_dimension_numbers<[1], [0], [0], [1], [0, 0, 1, 1], [], []>} : vector<8x8xbf16>, vector<8x4xbf16>, vector<8x4xf32> -> vector<8x4xf32>
    %89 = vector.extract_strided_slice %6 {offsets = [0, 20], sizes = [8, 4], strides = [1, 1]} : vector<8x32xbf16> to vector<8x4xbf16>
    %90 = vector.extract_strided_slice %7 {offsets = [0, 20], sizes = [8, 4], strides = [1, 1]} : vector<8x32xbf16> to vector<8x4xbf16>
    %91 = vector.extract_strided_slice %8 {offsets = [0, 20], sizes = [8, 4], strides = [1, 1]} : vector<8x32xbf16> to vector<8x4xbf16>
    %cst_24 = arith.constant dense<0.000000e+00> : vector<8x8xf32>
    %92 = tpu.matmul %89, %90, %cst_24 {dimension_numbers = #tpu.dot_dimension_numbers<[1], [1], [0], [0], [0, 0, 1, 0], [], []>} : vector<8x4xbf16>, vector<8x4xbf16>, vector<8x8xf32> -> vector<8x8xf32>
    %cst_25 = arith.constant dense<0xFF800000> : vector<8xf32>
    %93 = vector.multi_reduction <maximumf>, %92, %cst_25 [1] : vector<8x8xf32> to vector<8xf32>
    %94 = vector.shape_cast %93 : vector<8xf32> to vector<8x1xf32>
    %95 = vector.broadcast %94 : vector<8x1xf32> to vector<8x8xf32>
    %96 = arith.subf %92, %95 : vector<8x8xf32>
    %97 = math.exp %96 : vector<8x8xf32>
    %cst_26 = arith.constant dense<0.000000e+00> : vector<8xf32>
    %98 = vector.multi_reduction <add>, %97, %cst_26 [1] : vector<8x8xf32> to vector<8xf32>
    %99 = vector.shape_cast %98 : vector<8xf32> to vector<8x1xf32>
    %100 = tpu.reciprocal %99 {approx = true} : vector<8x1xf32> -> vector<8x1xf32>
    %101 = vector.broadcast %100 : vector<8x1xf32> to vector<8x8xf32>
    %102 = arith.mulf %97, %101 : vector<8x8xf32>
    %103 = arith.truncf %102 : vector<8x8xf32> to vector<8x8xbf16>
    %cst_27 = arith.constant dense<0.000000e+00> : vector<8x4xf32>
    %104 = tpu.matmul %103, %91, %cst_27 {dimension_numbers = #tpu.dot_dimension_numbers<[1], [0], [0], [1], [0, 0, 1, 1], [], []>} : vector<8x8xbf16>, vector<8x4xbf16>, vector<8x4xf32> -> vector<8x4xf32>
    %105 = vector.extract_strided_slice %6 {offsets = [0, 24], sizes = [8, 4], strides = [1, 1]} : vector<8x32xbf16> to vector<8x4xbf16>
    %106 = vector.extract_strided_slice %7 {offsets = [0, 24], sizes = [8, 4], strides = [1, 1]} : vector<8x32xbf16> to vector<8x4xbf16>
    %107 = vector.extract_strided_slice %8 {offsets = [0, 24], sizes = [8, 4], strides = [1, 1]} : vector<8x32xbf16> to vector<8x4xbf16>
    %cst_28 = arith.constant dense<0.000000e+00> : vector<8x8xf32>
    %108 = tpu.matmul %105, %106, %cst_28 {dimension_numbers = #tpu.dot_dimension_numbers<[1], [1], [0], [0], [0, 0, 1, 0], [], []>} : vector<8x4xbf16>, vector<8x4xbf16>, vector<8x8xf32> -> vector<8x8xf32>
    %cst_29 = arith.constant dense<0xFF800000> : vector<8xf32>
    %109 = vector.multi_reduction <maximumf>, %108, %cst_29 [1] : vector<8x8xf32> to vector<8xf32>
    %110 = vector.shape_cast %109 : vector<8xf32> to vector<8x1xf32>
    %111 = vector.broadcast %110 : vector<8x1xf32> to vector<8x8xf32>
    %112 = arith.subf %108, %111 : vector<8x8xf32>
    %113 = math.exp %112 : vector<8x8xf32>
    %cst_30 = arith.constant dense<0.000000e+00> : vector<8xf32>
    %114 = vector.multi_reduction <add>, %113, %cst_30 [1] : vector<8x8xf32> to vector<8xf32>
    %115 = vector.shape_cast %114 : vector<8xf32> to vector<8x1xf32>
    %116 = tpu.reciprocal %115 {approx = true} : vector<8x1xf32> -> vector<8x1xf32>
    %117 = vector.broadcast %116 : vector<8x1xf32> to vector<8x8xf32>
    %118 = arith.mulf %113, %117 : vector<8x8xf32>
    %119 = arith.truncf %118 : vector<8x8xf32> to vector<8x8xbf16>
    %cst_31 = arith.constant dense<0.000000e+00> : vector<8x4xf32>
    %120 = tpu.matmul %119, %107, %cst_31 {dimension_numbers = #tpu.dot_dimension_numbers<[1], [0], [0], [1], [0, 0, 1, 1], [], []>} : vector<8x8xbf16>, vector<8x4xbf16>, vector<8x4xf32> -> vector<8x4xf32>
    %121 = vector.extract_strided_slice %6 {offsets = [0, 28], sizes = [8, 4], strides = [1, 1]} : vector<8x32xbf16> to vector<8x4xbf16>
    %122 = vector.extract_strided_slice %7 {offsets = [0, 28], sizes = [8, 4], strides = [1, 1]} : vector<8x32xbf16> to vector<8x4xbf16>
    %123 = vector.extract_strided_slice %8 {offsets = [0, 28], sizes = [8, 4], strides = [1, 1]} : vector<8x32xbf16> to vector<8x4xbf16>
    %cst_32 = arith.constant dense<0.000000e+00> : vector<8x8xf32>
    %124 = tpu.matmul %121, %122, %cst_32 {dimension_numbers = #tpu.dot_dimension_numbers<[1], [1], [0], [0], [0, 0, 1, 0], [], []>} : vector<8x4xbf16>, vector<8x4xbf16>, vector<8x8xf32> -> vector<8x8xf32>
    %cst_33 = arith.constant dense<0xFF800000> : vector<8xf32>
    %125 = vector.multi_reduction <maximumf>, %124, %cst_33 [1] : vector<8x8xf32> to vector<8xf32>
    %126 = vector.shape_cast %125 : vector<8xf32> to vector<8x1xf32>
    %127 = vector.broadcast %126 : vector<8x1xf32> to vector<8x8xf32>
    %128 = arith.subf %124, %127 : vector<8x8xf32>
    %129 = math.exp %128 : vector<8x8xf32>
    %cst_34 = arith.constant dense<0.000000e+00> : vector<8xf32>
    %130 = vector.multi_reduction <add>, %129, %cst_34 [1] : vector<8x8xf32> to vector<8xf32>
    %131 = vector.shape_cast %130 : vector<8xf32> to vector<8x1xf32>
    %132 = tpu.reciprocal %131 {approx = true} : vector<8x1xf32> -> vector<8x1xf32>
    %133 = vector.broadcast %132 : vector<8x1xf32> to vector<8x8xf32>
    %134 = arith.mulf %129, %133 : vector<8x8xf32>
    %135 = arith.truncf %134 : vector<8x8xf32> to vector<8x8xbf16>
    %cst_35 = arith.constant dense<0.000000e+00> : vector<8x4xf32>
    %136 = tpu.matmul %135, %123, %cst_35 {dimension_numbers = #tpu.dot_dimension_numbers<[1], [0], [0], [1], [0, 0, 1, 1], [], []>} : vector<8x8xbf16>, vector<8x4xbf16>, vector<8x4xf32> -> vector<8x4xf32>
    %137 = tpu.concatenate %24, %40, %56, %72, %88, %104, %120, %136 in 1 : vector<8x4xf32>, vector<8x4xf32>, vector<8x4xf32>, vector<8x4xf32>, vector<8x4xf32>, vector<8x4xf32>, vector<8x4xf32>, vector<8x4xf32> -> vector<8x32xf32>
    %138 = arith.truncf %137 : vector<8x32xf32> to vector<8x32xbf16>
    %c0_36 = arith.constant 0 : index
    %c0_37 = arith.constant 0 : index
    %139 = vector.load %arg3[%c0_36, %c0_37] : memref<32x32xbf16, #tpu.memory_space<vmem>>, vector<32x32xbf16>
    %cst_38 = arith.constant dense<0.000000e+00> : vector<8x32xf32>
    %140 = tpu.matmul %138, %139, %cst_38 {dimension_numbers = #tpu.dot_dimension_numbers<[1], [0], [0], [1], [0, 0, 1, 1], [], []>} : vector<8x32xbf16>, vector<32x32xbf16>, vector<8x32xf32> -> vector<8x32xf32>
    %c0_39 = arith.constant 0 : index
    %c0_40 = arith.constant 0 : index
    %141 = vector.load %arg4[%c0_39, %c0_40] : memref<1x32xf32, #tpu.memory_space<vmem>>, vector<1x32xf32>
    %142 = vector.broadcast %141 : vector<1x32xf32> to vector<8x32xf32>
    %143 = arith.addf %140, %142 : vector<8x32xf32>
    %144 = vector.shape_cast %143 : vector<8x32xf32> to vector<1x8x32xf32>
    %c0_41 = arith.constant 0 : index
    %c0_42 = arith.constant 0 : index
    %c0_43 = arith.constant 0 : index
    %145 = vector.load %arg5[%c0_41, %c0_42, %c0_43] : memref<1x8x32xf32, #tpu.memory_space<vmem>>, vector<1x8x32xf32>
    tpu.vector_store %arg5[%c0_41, %c0_42, %c0_43], %144 {strides = array<i32>} : memref<1x8x32xf32, #tpu.memory_space<vmem>>, vector<1x8x32xf32>,
    return
  }
  func.func @transform_0(%arg0: i32) -> (i32, i32, i32) {
    %c0_i32 = arith.constant 0 : i32
    %c0_i32_0 = arith.constant 0 : i32
    %c0_i32_1 = arith.constant 0 : i32
    return %arg0, %c0_i32, %c0_i32_0 : i32, i32, i32
  }
  func.func @transform_1(%arg0: i32) -> (i32, i32) {
    %c0_i32 = arith.constant 0 : i32
    %c0_i32_0 = arith.constant 0 : i32
    %c0_i32_1 = arith.constant 0 : i32
    return %c0_i32, %c0_i32_0 : i32, i32
  }
  func.func @transform_2(%arg0: i32) -> (i32, i32) {
    %c0_i32 = arith.constant 0 : i32
    %c0_i32_0 = arith.constant 0 : i32
    %c0_i32_1 = arith.constant 0 : i32
    return %c0_i32, %c0_i32_0 : i32, i32
  }
  func.func @transform_3(%arg0: i32) -> (i32, i32) {
    %c0_i32 = arith.constant 0 : i32
    %c0_i32_0 = arith.constant 0 : i32
    %c0_i32_1 = arith.constant 0 : i32
    return %c0_i32, %c0_i32_0 : i32, i32
  }
  func.func @transform_4(%arg0: i32) -> (i32, i32, i32) {
    %c0_i32 = arith.constant 0 : i32
    %c0_i32_0 = arith.constant 0 : i32
    %c0_i32_1 = arith.constant 0 : i32
    return %arg0, %c0_i32, %c0_i32_0 : i32, i32, i32
  }
}

</mosaic_0001>

<bundles_post_ra>
// kernel: tpu_custom_call.1
= control target key start
LH: loop header
LB: loop body
LE: loop exit
PB: predicated region body
PF: predicated region fallthrough
CT: control target
= control target key end

     0   :  { %9 = vsyncpa [#allocation3], 0  ;;  %s2357_s0 = inlined_call_operand.hbm [shape: f32[2,8,32], index: 0, kind: input, shape index: {}]   ;;  %s2358_s1 = inlined_call_operand.hbm [shape: bf16[32,96], index: 1, kind: input, shape index: {}]   ;;  %s2359_s2 = inlined_call_operand.hbm [shape: bf16[32,32], index: 2, kind: input, shape index: {}]   ;;  %s2360_s3 = inlined_call_operand.vmem [shape: f32[1,32], index: 3, kind: input, shape index: {}]   ;;  %s2361_s4 = inlined_call_operand.hbm [shape: f32[2,8,32], index: 4, kind: output, shape index: {}]  }
   0x1   :  { %11 = vsyncpa [#allocation3 + $0x1], 0 }
   0x2   :  { %12 = vsyncpa [#allocation6], 0 }
   0x3   :  { %13 = vsyncpa [#allocation4], 0 }
   0x4   :  { %15 = vsyncpa [#allocation4 + $0x1], 0  ;;  %s1946_s15 = smov 0   ;;  %s1948_s16 = smov 0  }
   0x5   :  { %s1950_s17 = smov 0   ;;  %s1952_s18 = smov 0  }
   0x6 LB: > { %s1967_s19 = sadd.s32 4294967295, %s1881_s18   ;;  %s1399_s20 = sadd.s32 4294967294, %s1881_s18   ;;  %s1881_s18 = sphi %s1952_s18, %s2381_s18   ;;  %s1877_s17 = sphi %s1950_s17, %s2380_s17   ;;  %s1873_s16 = sphi %s1948_s16, %s2379_s16   ;;  %s1869_s15 = sphi %s1946_s15, %s2378_s15  }
   0x7   : > { %p41_p0 = scmp.ne.s32.totalorder %s1873_s16, %s1869_s15  ;;  %p2362_p1 = scmp.eq.s32.totalorder %s1967_s19, 0 }
   0x8   : > { %p134_p3 = scmp.eq.s32.totalorder %s1399_s20, 1  ;;  %p1400_p5 = scmp.ge.s32.totalorder %s1881_s18, 1 }
   0x9   : > { %p1976_p4 = por %p2362_p1, %p41_p0  ;;  %p141_p7 = scmp.lt.s32.totalorder %s1881_s18, 3 }
   0xa   : > { %p1981_p6 = por %p134_p3, %p41_p0  ;;  %s1883_s24 = smov [#allocation5]  }
   0xb   : > { %s2365_s21 = scalar_select %p1976_p4, 1, 0 }
   0xc   : > { %s2366_s22 = scalar_select %p1981_p6, 1, 0 }
   0xd   : > { %p1986_p8 = pnand %p1400_p5, %p141_p7  ;;  %s153_s25 = sshll.u32 %s1883_s24, 4  ;;  %s1990_s25 = int_to_ptr.vmem [resolvable:$true] %s153_s25 }
   0xe   : > { %s1884_s27 = smov [#allocation7]   ;;  %s1725_s5 = scalar_lea.hbm %s2358_s1, 256 }
   0xf   : > { %p1600_p9 = pneg %p1986_p8  ;;  %s166_s28 = sshll.u32 %s1884_s27, 4  ;;  %s2001_s28 = int_to_ptr.vmem [resolvable:$true] %s166_s28 }
  0x10   : > { %p1726_p12 = scmp.ne.s32.totalorder %s2358_s1, %s1725_s5  ;;  %p1732_p5 = scmp.lt.u32.totalorder %s1725_s5, %s2358_s1 }
  0x11   : > { %p1997_p11 = pnand %p1600_p9, %p2362_p1 }
  0x13   : > { %p1727_p13 = pneg %p1997_p11 }
  0x15   : > { %p1728_p0 = pnand %p1727_p13, %p1726_p12 }
  0x17   : > { %p1729_p3 = pneg %p1728_p0 }
  0x19   : > { %p1734_p7 = pnand %p1732_p5, %p1729_p3 }
  0x1b   : > { %1737 = shalt.err (!%p1734_p7)
}
  0x1c   : > { %s1738_s10 = scalar_lea.vmem %s1990_s25, 256  ;;  %p1746_p2 = scmp.lt.s32.totalorder %s1990_s25, %s1990_s25 }
  0x1d   : > { %p1739_p9 = scmp.ne.s32.totalorder %s1990_s25, %s1738_s10  ;;  %p1747_p12 = scmp.lt.s32.totalorder %s1738_s10, %s1738_s10 }
  0x1f   : > { %p1741_p10 = pnand %p1739_p9, %p1727_p13  ;;  %p1748_p0 = por %p1747_p12, %p1746_p2 }
  0x21   : > { %p1742_p1 = pneg %p1741_p10 }
  0x23   : > { %p1749_p6 = pnand %p1748_p0, %p1742_p1 }
  0x25   : > { %1752 = shalt.err (!%p1749_p6)
}
  0x26   : > { %s1885_s11 = smov 64   ;;  %s1886_s12 = smov 4  }
  0x27   : > { %1603 = dma.hbm_to_vmem [thread:$0]  (!%p1997_p11), %s2358_s1, 256, %s1990_s25, [#allocation6], %s1885_s11, %s1885_s11, %s1886_s12  }
  0x28   : > { %s1753_s27 = scalar_lea.hbm %s2359_s2, 256 }
  0x29   : > { %p1754_p2 = scmp.ne.s32.totalorder %s2359_s2, %s1753_s27  ;;  %p1760_p10 = scmp.lt.u32.totalorder %s1753_s27, %s2359_s2 }
  0x2b   : > { %p1756_p1 = pnand %p1754_p2, %p1727_p13 }
  0x2d   : > { %p1757_p6 = pneg %p1756_p1 }
  0x2f   : > { %p1762_p3 = pnand %p1760_p10, %p1757_p6 }
  0x31   : > { %1765 = shalt.err (!%p1762_p3)
}
  0x32   : > { %s1766_s25 = scalar_lea.vmem %s2001_s28, 256  ;;  %p1774_p12 = scmp.lt.s32.totalorder %s2001_s28, %s2001_s28 }
  0x33   : > { %p1767_p5 = scmp.ne.s32.totalorder %s2001_s28, %s1766_s25  ;;  %p1775_p0 = scmp.lt.s32.totalorder %s1766_s25, %s1766_s25 }
  0x35   : > { %p1769_p7 = pnand %p1767_p5, %p1727_p13  ;;  %p1776_p2 = por %p1775_p0, %p1774_p12 }
  0x37   : > { %p1770_p9 = pneg %p1769_p7 }
  0x39   : > { %p1777_p1 = pnand %p1776_p2, %p1770_p9 }
  0x3b   : > { %1780 = shalt.err (!%p1777_p1)
}
  0x3c   : > { %1606 = dma.hbm_to_vmem [thread:$0]  (!%p1997_p11), %s2359_s2, 256, %s2001_s28, [#allocation6], %s1885_s11, %s1885_s11, %s1886_s12  }
  0x3d   : > { %s2056_s9 = sadd.s32 1, %s1881_s18   ;;  %s28_s26 = sadd.s32 1, %s1877_s17 }
  0x3e   : > { %s25_s10 = ssub.s32 %s1881_s18, %s2056_s9  ;;  %p35_p13 = scmp.ne.s32.totalorder %s1877_s17, %s1873_s16 }
  0x3f   : > { %p26_p6 = scmp.eq.s32.totalorder %s25_s10, 0  ;;  %p36_p10 = scmp.eq.s32.totalorder %s1881_s18, 0 }
  0x40   : > { %p2369_p3 = scmp.eq.s32.totalorder %s1967_s19, 1  ;;  %p1617_p7 = scmp.lt.s32.totalorder %s1881_s18, 2 }
  0x41   : > { %s2072_s14 = scalar_select %p26_p6, %s1877_s17, %s28_s26  }
  0x42   : > { %p2066_p5 = por %p2369_p3, %p35_p13  ;;  %p37_p9 = por %p36_p10, %p35_p13 }
  0x43   : > { %s183_s20 = sand.u32 1, %s1877_s17   ;;  %s1405_s28 = sshll.u32 %s1881_s18, 7 }
  0x44   : > { %s2370_s13 = scalar_select %p2066_p5, 1, 0 }
  0x45   : > { %s1404_s24 = sshll.u32 %s183_s20, 3  ;;  %s2079_s27 = scalar_lea.hbm %s2357_s0, %s1405_s28 }
  0x46   : > { %s187_s29 = scalar_lea.vmem [#allocation2], %s1404_s24  ;;  %p2083_p11 = pnand %p1617_p7, %p37_p9 }
  0x47   : > { %s194_s30 = sshll.u32 %s187_s29, 4  ;;  %s184_s6 = scalar_lea.sflag [#allocation3], %s183_s20  ;;  %s2081_s30 = int_to_ptr.vmem [resolvable:$true] %s194_s30 }
  0x48   : > { %s1781_s25 = scalar_lea.hbm %s2079_s27, 128  ;;  %p1783_p0 = pneg %p2083_p11 }
  0x49   : > { %p1782_p12 = scmp.ne.s32.totalorder %s2079_s27, %s1781_s25  ;;  %s1786_s26 = scalar_lea.hbm %s2357_s0, 256 }
  0x4a   : > { %p1787_p13 = scmp.lt.u32.totalorder %s2079_s27, %s2357_s0  ;;  %p1788_p6 = scmp.lt.u32.totalorder %s1786_s26, %s1781_s25 }
  0x4b   : > { %p1784_p2 = pnand %p1783_p0, %p1782_p12  ;;  %p1790_p3 = scmp.lt.u32.totalorder %s1781_s25, %s2079_s27 }
  0x4c   : > { %p1789_p10 = por %p1788_p6, %p1787_p13 }
  0x4d   : > { %p1785_p1 = pneg %p1784_p2 }
  0x4e   : > { %p1791_p7 = por %p1790_p3, %p1789_p10 }
  0x50   : > { %p1792_p9 = pnand %p1791_p7, %p1785_p1 }
  0x52   : > { %1795 = shalt.err (!%p1792_p9)
}
  0x53   : > { %s1796_s20 = scalar_lea.vmem %s2081_s30, 128  ;;  %s1887_s28 = smov [#allocation2]  }
  0x54   : > { %p1797_p12 = scmp.ne.s32.totalorder %s2081_s30, %s1796_s20  ;;  %s1801_s11 = sshll.u32 %s1887_s28, 4  ;;  %s1802_s11 = int_to_ptr.vmem [resolvable:$false] %s1801_s11 }
  0x55   : > { %s1803_s12 = scalar_lea.vmem %s1802_s11, 256  ;;  %p1804_p4 = scmp.lt.s32.totalorder %s2081_s30, %s1802_s11 }
  0x56   : > { %p1799_p2 = pnand %p1797_p12, %p1783_p0  ;;  %p1805_p13 = scmp.lt.s32.totalorder %s1803_s12, %s1796_s20 }
  0x58   : > { %p1800_p5 = pneg %p1799_p2  ;;  %p1806_p6 = por %p1805_p13, %p1804_p4 }
  0x5a   : > { %p1807_p10 = pnand %p1806_p6, %p1800_p5 }
  0x5c   : > { %1810 = shalt.err (!%p1807_p10)
}
  0x5d   : > { %1610 = dma.hbm_to_vmem [thread:$0]  (!%p2083_p11), %s2079_s27, 128, %s2081_s30, %s184_s6  }
  0x5e   : > { %203 = sbr.rel (%p1986_p8) target bundleno = 1648 (0x670), region = 36  ;;  %s2115_s29 = sand.u32 (!%p1986_p8), 1, %s1873_s16  }
  0x5f   : > { %s1407_s25 = sshll.u32 (!%p1986_p8), %s2115_s29, 3  ;;  %s206_s7 = scalar_lea.sflag (!%p1986_p8), [#allocation3], %s2115_s29 }
  0x60   : > { %s209_s8 = scalar_lea.vmem (!%p1986_p8), [#allocation2], %s1407_s25  ;;  %p2372_p4 = scmp.ne.s32.totalorder (!%p1986_p8), %s2365_s21, 0 }
  0x65   : > { %1856 = dma.done.wait (%p2372_p4), %s206_s7, 128  }
  0x66   : > { %1858 = vsyncadd (%p2372_p4), %s206_s7, 4294967168  ;;  %p2373_p5 = scmp.eq.s32.totalorder %s1967_s19, 0 }
  0x68   : > { %1860 = dma.done.wait (%p2373_p5), [#allocation6], 512   ;;  %p2374_p8 = pmov %p2373_p5 }
  0x69   : > { %v1888_v0 = vmov 0.0   ;;  %vm1889_vm0 = vmmov 0   ;;  %v1689_v1 = vld [vmem:[#allocation5] sm:$0xff]   ;;  %v1690_v2 = vld [vmem:[#allocation5 + $0x8] sm:$0xff]   ;;  %v243_v3 = vld [vmem:[%s209_s8] sm:$0xff]  ;;  %vm261_vm1 = vcmask 261120  }
  0x6a   : > { %1862 = vsyncadd (%p2374_p8), [#allocation6], 4294966784  ;;  %1476 = vmatprep.subr.bf16.mxu0 %v1888_v0  ;;  %1480 = vmatprep.mubr.msk.bf16.mxu0 %vm1889_vm0, %v1888_v0  ;;  %v244_v4 = vpack.c.bf16 %v243_v3, %v243_v3  ;;  %s1890_s21 = smov 124   ;;  %s1891_s23 = smov 96   ;;  %vm309_vm2 = vcmask 31744   ;;  %vm356_vm3 = vcmask 64512  }
  0x6b   : > { %1484 = vmatprep.subr.bf16.mxu1 %v1888_v0  ;;  %1486 = vmatprep.mubr.msk.bf16.mxu1 %vm1889_vm0, %v1888_v0  ;;  %s1892_s27 = smov 88   ;;  %s1893_s30 = smov 92   ;;  %vm374_vm4 = vcmask 1043456   ;;  %vm1218_vm5 = vcmask 97280   ;;  %vm1220_vm6 = vcmask 130048   ;;  %vm1222_vm7 = vcmask 162816  }
  0x6c   : > { %1477 = vmatpush3.bf16.msra.mxu0 %v1689_v1  ;;  %s1894_s5 = smov 84   ;;  %s1895_s6 = smov 120   ;;  %vm1224_vm8 = vcmask 195584   ;;  %vm1226_vm9 = vcmask 228352  }
  0x6d   : > { %1478 = vmatprep.subr.bf16.mxu0 %v1888_v0  ;;  %s1896_s26 = smov 80   ;;  %s1897_s10 = smov 116  }
  0x6e   : > { %s1898_s24 = smov 76   ;;  %s1899_s20 = smov 112  }
  0x6f   : > { %s1900_s28 = smov 72   ;;  %s1901_s11 = smov 108  }
  0x70   : > { %1479 = vmatpush3.bf16.msra.mxu0 %v1690_v2  ;;  %s1902_s12 = smov 68   ;;  %s1903_s7 = smov 104  }
  0x71   : > { %1490 = vmatprep.subr.bf16.mxu0 %v1888_v0  ;;  %s1904_s8 = smov 100   ;;  %p2375_p0 = scmp.ne.s32.totalorder %s2370_s13, 0 }
  0x73   : > { %1481 = vmatmul.mubr.msk.bf16.vlgmr.msra.gmra.mrb[0].mxu0 %vm261_vm1, %v244_v4 }
  0x74   : > { %1492 = vmatprep.mubr.msk.bf16.mxu0 %vm1889_vm0, %v1888_v0 }
 0x146   : > { %v299_v5 = vpop.f32.mrb[0].mxu0 }
 0x147   : > { %v2140_v6 = vpack.c.bf16 %v299_v5, %v299_v5  ;;  %v1482_v7 = vpop.f32.mrb[1].mxu0 }
 0x148   : > { %v302_v8 = vpop.f32.mrb[2].mxu0 }
 0x149   : > { %418 = vrot.lane.b32.xlu1 %v2140_v6, %s1890_s21  ;;  %307 = vrot.lane.b32.xlu0 %v2140_v6, %s1891_s23  ;;  %v1483_v9 = vpop.f32.mrb[3].mxu0  ;;  %s1905_s21 = smov 60   ;;  %s1906_s23 = smov 64  }
 0x14d   : > { %530 = vrot.lane.b32.xlu1 %v2140_v6, %s1892_s27  ;;  %420 = vrot.lane.b32.xlu0 %v2140_v6, %s1893_s30  ;;  %s1907_s27 = smov 56   ;;  %s1908_s30 = smov 52  }
 0x151   : > { %640 = vrot.lane.b32.xlu1 %v2140_v6, %s1894_s5  ;;  %528 = vrot.lane.b32.xlu0 %v2140_v6, %s1895_s6  ;;  %s1909_s5 = smov 44   ;;  %s1910_s6 = smov 40  }
 0x155   : > { %750 = vrot.lane.b32.xlu1 %v2140_v6, %s1896_s26  ;;  %638 = vrot.lane.b32.xlu0 %v2140_v6, %s1897_s10  ;;  %s1911_s26 = smov 36   ;;  %s1912_s10 = smov 48  }
 0x159   : > { %860 = vrot.lane.b32.xlu1 %v2140_v6, %s1898_s24  ;;  %748 = vrot.lane.b32.xlu0 %v2140_v6, %s1899_s20  ;;  %s1913_s24 = smov 4   ;;  %s1914_s20 = smov 8  }
 0x15d   : > { %970 = vrot.lane.b32.xlu1 %v2140_v6, %s1900_s28  ;;  %858 = vrot.lane.b32.xlu0 %v2140_v6, %s1901_s11  ;;  %s1915_s28 = smov 12   ;;  %s1916_s11 = smov 16  }
 0x161   : > { %1080 = vrot.lane.b32.xlu1 %v2140_v6, %s1902_s12  ;;  %968 = vrot.lane.b32.xlu0 %v2140_v6, %s1903_s7  ;;  %s1917_s12 = smov 20   ;;  %s1918_s7 = smov 24  }
 0x165   : > { %1078 = vrot.lane.b32.xlu0 %v2140_v6, %s1904_s8  ;;  %s1919_s8 = smov 28  }
 0x1bb   : > { %v308_v10 = vpop.permute.xlu0 %307  ;;  %v419_v13 = vpop.permute.xlu1 %418 }
 0x1bc   : > { %v314_v11 = vsel %vm309_vm2, %v308_v10, 0 }
 0x1bd   : > { %1485 = vmatpush3.bf16.xpose.msra.mxu1 %v314_v11 }
 0x1be   : > { %1496 = vmatprep.subr.bf16.mxu1 %v1888_v0 }
 0x1bf   : > { %v421_v12 = vpop.permute.xlu0 %420  ;;  %v531_v15 = vpop.permute.xlu1 %530 }
 0x1c0   : > { %v426_v14 = vsel %vm309_vm2, %v421_v12, 0  ;;  %v536_v16 = vsel %vm309_vm2, %v531_v15, 0 }
 0x1c3   : > { %v641_v17 = vpop.permute.xlu1 %640  ;;  %v529_v18 = vpop.permute.xlu0 %528 }
 0x1c4   : > { %1487 = vmatmul.mubr.msk.bf16.vlgmr.msra.gmra.mrb[0].mxu1 %vm309_vm2, %v2140_v6  ;;  %v646_v19 = vsel %vm309_vm2, %v641_v17, 0 }
 0x1c5   : > { %1497 = vmatpush3.bf16.xpose.msra.mxu1 %v426_v14  ;;  %1498 = vmatprep.mubr.msk.bf16.mxu1 %vm1889_vm0, %v1888_v0 }
 0x1c6   : > { %1508 = vmatprep.subr.bf16.mxu1 %v1888_v0 }
 0x1c7   : > { %v751_v20 = vpop.permute.xlu1 %750  ;;  %v639_v21 = vpop.permute.xlu0 %638 }
 0x1c8   : > { %v756_v22 = vsel %vm309_vm2, %v751_v20, 0 }
 0x1cb   : > { %v861_v23 = vpop.permute.xlu1 %860  ;;  %v749_v24 = vpop.permute.xlu0 %748 }
 0x1cc   : > { %1499 = vmatmul.mubr.msk.bf16.vlgmr.msra.gmra.mrb[4].mxu1 %vm309_vm2, %v419_v13  ;;  %v866_v25 = vsel %vm309_vm2, %v861_v23, 0 }
 0x1cd   : > { %1509 = vmatpush3.bf16.xpose.msra.mxu1 %v536_v16  ;;  %1510 = vmatprep.mubr.msk.bf16.mxu1 %vm1889_vm0, %v1888_v0 }
 0x1ce   : > { %1520 = vmatprep.subr.bf16.mxu1 %v1888_v0 }
 0x1cf   : > { %v971_v26 = vpop.permute.xlu1 %970  ;;  %v859_v27 = vpop.permute.xlu0 %858 }
 0x1d0   : > { %v976_v28 = vsel %vm309_vm2, %v971_v26, 0 }
 0x1d3   : > { %v1081_v29 = vpop.permute.xlu1 %1080  ;;  %v969_v30 = vpop.permute.xlu0 %968 }
 0x1d4   : > { %1511 = vmatmul.mubr.msk.bf16.vlgmr.msra.gmra.mrb[8].mxu1 %vm309_vm2, %v529_v18  ;;  %v1086_v31 = vsel %vm309_vm2, %v1081_v29, 0 }
 0x1d5   : > { %1521 = vmatpush3.bf16.xpose.msra.mxu1 %v646_v19  ;;  %1522 = vmatprep.mubr.msk.bf16.mxu1 %vm1889_vm0, %v1888_v0 }
 0x1d6   : > { %1532 = vmatprep.subr.bf16.mxu1 %v1888_v0 }
 0x1d7   : > { %v1079_v32 = vpop.permute.xlu0 %1078 }
 0x1dc   : > { %1523 = vmatmul.mubr.msk.bf16.vlgmr.msra.gmra.mrb[12].mxu1 %vm309_vm2, %v639_v21 }
 0x1dd   : > { %1533 = vmatpush3.bf16.xpose.msra.mxu1 %v756_v22  ;;  %1534 = vmatprep.mubr.msk.bf16.mxu1 %vm1889_vm0, %v1888_v0 }
 0x1de   : > { %1544 = vmatprep.subr.bf16.mxu1 %v1888_v0 }
 0x1e4   : > { %1535 = vmatmul.mubr.msk.bf16.vlgmr.msra.gmra.mrb[16].mxu1 %vm309_vm2, %v749_v24 }
 0x1e5   : > { %1545 = vmatpush3.bf16.xpose.msra.mxu1 %v866_v25  ;;  %1546 = vmatprep.mubr.msk.bf16.mxu1 %vm1889_vm0, %v1888_v0 }
 0x1e6   : > { %1556 = vmatprep.subr.bf16.mxu1 %v1888_v0 }
 0x1ec   : > { %1547 = vmatmul.mubr.msk.bf16.vlgmr.msra.gmra.mrb[20].mxu1 %vm309_vm2, %v859_v27 }
 0x1ed   : > { %1557 = vmatpush3.bf16.xpose.msra.mxu1 %v976_v28  ;;  %1558 = vmatprep.mubr.msk.bf16.mxu1 %vm1889_vm0, %v1888_v0 }
 0x1ee   : > { %1568 = vmatprep.subr.bf16.mxu1 %v1888_v0 }
 0x1f4   : > { %1559 = vmatmul.mubr.msk.bf16.vlgmr.msra.gmra.mrb[24].mxu1 %vm309_vm2, %v969_v30 }
 0x1f5   : > { %1569 = vmatpush3.bf16.xpose.msra.mxu1 %v1086_v31  ;;  %1570 = vmatprep.mubr.msk.bf16.mxu1 %vm1889_vm0, %v1888_v0 }
 0x1f6   : > { %1580 = vmatprep.subr.bf16.mxu1 %v1888_v0 }
 0x1fc   : > { %1571 = vmatmul.mubr.msk.bf16.vlgmr.msra.gmra.mrb[28].mxu1 %vm309_vm2, %v1079_v32 }
 0x1fd   : > { %1584 = vmatprep.mubr.msk.bf16.mxu1 %vm1889_vm0, %v1888_v0 }
 0x297   : > { %v350_v33 = vpop.f32.mrb[0].mxu1 }
 0x298   : > { %v1488_v34 = vpop.f32.mrb[1].mxu1  ;;  %v357_v35 = vsel %vm356_vm3, %v350_v33, -inf }
 0x299   : > { %358 = vmax.xlane.f32.xlu1 %v357_v35  ;;  %v353_v36 = vpop.f32.mrb[2].mxu1 }
 0x29a   : > { %v1489_v37 = vpop.f32.mrb[3].mxu1 }
 0x29f   : > { %v462_v38 = vpop.f32.mrb[4].mxu1 }
 0x2a0   : > { %v1500_v39 = vpop.f32.mrb[5].mxu1  ;;  %v468_v40 = vsel %vm356_vm3, %v462_v38, -inf }
 0x2a1   : > { %469 = vmax.xlane.f32.xlu0 %v468_v40  ;;  %v465_v41 = vpop.f32.mrb[6].mxu1 }
 0x2a2   : > { %v1501_v42 = vpop.f32.mrb[7].mxu1 }
 0x2a7   : > { %v572_v43 = vpop.f32.mrb[8].mxu1 }
 0x2a8   : > { %v1512_v44 = vpop.f32.mrb[9].mxu1  ;;  %v578_v45 = vsel %vm356_vm3, %v572_v43, -inf }
 0x2a9   : > { %579 = vmax.xlane.f32.xlu0 %v578_v45  ;;  %v575_v46 = vpop.f32.mrb[10].mxu1 }
 0x2aa   : > { %v1513_v47 = vpop.f32.mrb[11].mxu1 }
 0x2af   : > { %v682_v48 = vpop.f32.mrb[12].mxu1 }
 0x2b0   : > { %v1524_v49 = vpop.f32.mrb[13].mxu1  ;;  %v688_v50 = vsel %vm356_vm3, %v682_v48, -inf }
 0x2b1   : > { %689 = vmax.xlane.f32.xlu1 %v688_v50  ;;  %v685_v51 = vpop.f32.mrb[14].mxu1 }
 0x2b2   : > { %v1525_v52 = vpop.f32.mrb[15].mxu1 }
 0x2b7   : > { %v792_v53 = vpop.f32.mrb[16].mxu1 }
 0x2b8   : > { %v1536_v54 = vpop.f32.mrb[17].mxu1  ;;  %v798_v55 = vsel %vm356_vm3, %v792_v53, -inf }
 0x2b9   : > { %799 = vmax.xlane.f32.xlu0 %v798_v55  ;;  %v795_v56 = vpop.f32.mrb[18].mxu1 }
 0x2ba   : > { %v1537_v57 = vpop.f32.mrb[19].mxu1 }
 0x2bf   : > { %v2203_v58 = vpop.f32.mrb[20].mxu1 }
 0x2c0   : > { %v1548_v59 = vpop.f32.mrb[21].mxu1  ;;  %v908_v60 = vsel %vm356_vm3, %v2203_v58, -inf }
 0x2c1   : > { %909 = vmax.xlane.f32.xlu1 %v908_v60  ;;  %v905_v61 = vpop.f32.mrb[22].mxu1 }
 0x2c2   : > { %v1549_v62 = vpop.f32.mrb[23].mxu1 }
 0x2c7   : > { %v1012_v63 = vpop.f32.mrb[24].mxu1 }
 0x2c8   : > { %v1560_v1 = vpop.f32.mrb[25].mxu1  ;;  %v1018_v2 = vsel %vm356_vm3, %v1012_v63, -inf }
 0x2c9   : > { %1019 = vmax.xlane.f32.xlu0 %v1018_v2  ;;  %v1015_v3 = vpop.f32.mrb[26].mxu1 }
 0x2ca   : > { %v1561_v4 = vpop.f32.mrb[27].mxu1 }
 0x2cf   : > { %v2208_v5 = vpop.f32.mrb[28].mxu1 }
 0x2d0   : > { %v1572_v7 = vpop.f32.mrb[29].mxu1  ;;  %v1128_v10 = vsel %vm356_vm3, %v2208_v5, -inf }
 0x2d1   : > { %v1125_v8 = vpop.f32.mrb[30].mxu1 }
 0x2d2   : > { %480 = vrot.lane.b32.xlu1 %v2140_v6, %s1905_s21  ;;  %v1573_v9 = vpop.f32.mrb[31].mxu1 }
 0x2df   : > { %369 = vrot.lane.b32.xlu0 %v2140_v6, %s1906_s23 }
 0x2f6   : > { %1129 = vmax.xlane.f32.xlu1 %v1128_v10 }
 0x307   : > { %590 = vrot.lane.b32.xlu1 %v2140_v6, %s1907_s27  ;;  %s1435_s27 = sshll.u32 %s1967_s19, 7  ;;  %s1297_s19 = scalar_lea.sflag [#allocation4], %s2115_s29 }
 0x326   : > { %v359_v11 = vpop.xlane.xlu1 %358 }
 0x327   : > { %v360_v12 = vsub.f32 %v350_v33, %v359_v11 }
 0x329   : > { %v361_v13 = vmul.f32 1.442695, %v360_v12 }
 0x32b   : > { %1693 = vpow2.f32 %v361_v13 }
 0x32e   : > { %v470_v14 = vpop.xlane.xlu0 %469 }
 0x32f   : > { %v471_v15 = vsub.f32 %v462_v38, %v470_v14 }
 0x331   : > { %v472_v16 = vmul.f32 1.442695, %v471_v15 }
 0x333   : > { %1695 = vpow2.f32 %v472_v16 }
 0x335   : > { %v2215_v17 = vpop.eup %1693 }
 0x336   : > { %v580_v18 = vpop.xlane.xlu0 %579  ;;  %v363_v19 = vsel %vm356_vm3, %v2215_v17, 0.0 }
 0x337   : > { %v581_v20 = vsub.f32 %v572_v43, %v580_v18  ;;  %364 = vadd.xlane.f32.xlu0 %v363_v19 }
 0x339   : > { %v582_v21 = vmul.f32 1.442695, %v581_v20 }
 0x33b   : > { %1697 = vpow2.f32 %v582_v21 }
 0x33d   : > { %v2219_v22 = vpop.eup %1695 }
 0x33e   : > { %v690_v23 = vpop.xlane.xlu1 %689  ;;  %v474_v24 = vsel %vm356_vm3, %v2219_v22, 0.0 }
 0x33f   : > { %v691_v25 = vsub.f32 %v682_v48, %v690_v23  ;;  %475 = vadd.xlane.f32.xlu1 %v474_v24 }
 0x341   : > { %v692_v26 = vmul.f32 1.442695, %v691_v25 }
 0x343   : > { %1699 = vpow2.f32 %v692_v26 }
 0x345   : > { %v2223_v27 = vpop.eup %1697 }
 0x346   : > { %v800_v28 = vpop.xlane.xlu0 %799  ;;  %v584_v29 = vsel %vm356_vm3, %v2223_v27, 0.0 }
 0x347   : > { %v801_v30 = vsub.f32 %v792_v53, %v800_v28  ;;  %585 = vadd.xlane.f32.xlu0 %v584_v29 }
 0x349   : > { %v802_v31 = vmul.f32 1.442695, %v801_v30 }
 0x34b   : > { %1701 = vpow2.f32 %v802_v31 }
 0x34d   : > { %v2227_v32 = vpop.eup %1699 }
 0x34e   : > { %v694_v33 = vsel %vm356_vm3, %v2227_v32, 0.0  ;;  %v910_v41 = vpop.xlane.xlu1 %909 }
 0x34f   : > { %695 = vadd.xlane.f32.xlu1 %v694_v33  ;;  %v911_v43 = vsub.f32 %v2203_v58, %v910_v41 }
 0x351   : > { %v912_v45 = vmul.f32 1.442695, %v911_v43 }
 0x352   : > { %v481_v48 = vpop.permute.xlu1 %480 }
 0x353   : > { %v486_v60 = vsel %vm374_vm4, %v481_v48, 0 }
 0x355   : > { %v2231_v34 = vpop.eup %1701 }
 0x356   : > { %v1020_v35 = vpop.xlane.xlu0 %1019  ;;  %v804_v36 = vsel %vm356_vm3, %v2231_v34, 0.0 }
 0x357   : > { %v1021_v37 = vsub.f32 %v1012_v63, %v1020_v35  ;;  %805 = vadd.xlane.f32.xlu1 %v804_v36 }
 0x359   : > { %v1022_v38 = vmul.f32 1.442695, %v1021_v37 }
 0x35a   : > { %v370_v39 = vpop.permute.xlu0 %369 }
 0x35b   : > { %1703 = vpow2.f32 %v1022_v38  ;;  %v376_v40 = vsel %vm374_vm4, %v370_v39, 0 }
 0x35c   : > { %1491 = vmatpush3.bf16.msra.mxu0 %v376_v40  ;;  %1705 = vpow2.f32 %v912_v45 }
 0x35d   : > { %700 = vrot.lane.b32.xlu0 %v2140_v6, %s1908_s30  ;;  %1502 = vmatprep.subr.bf16.mxu0 %v1888_v0  ;;  %s241_s30 = scalar_lea.vmem [#allocation8], %s1407_s25 }
 0x365   : > { %v2238_v42 = vpop.eup %1703 }
 0x366   : > { %v1024_v44 = vsel %vm356_vm3, %v2238_v42, 0.0  ;;  %v2243_v46 = vpop.eup %1705 }
 0x367   : > { %1025 = vadd.xlane.f32.xlu1 %v1024_v44  ;;  %v914_v47 = vsel %vm356_vm3, %v2243_v46, 0.0 }
 0x37c   : > { %915 = vadd.xlane.f32.xlu0 %v914_v47 }
 0x383   : > { %v1130_v49 = vpop.xlane.xlu1 %1129 }
 0x384   : > { %v1131_v50 = vsub.f32 %v2208_v5, %v1130_v49 }
 0x386   : > { %v1132_v51 = vmul.f32 1.442695, %v1131_v50 }
 0x387   : > { %v591_v55 = vpop.permute.xlu1 %590 }
 0x388   : > { %1707 = vpow2.f32 %v1132_v51  ;;  %v596_v1 = vsel %vm374_vm4, %v591_v55, 0 }
 0x392   : > { %v2248_v52 = vpop.eup %1707  ;;  %920 = vrot.lane.b32.xlu0 %v2140_v6, %s1909_s5  ;;  %s1310_s5 = sshll.u32 %s241_s30, 4  ;;  %s2314_s5 = int_to_ptr.vmem [resolvable:$true] %s1310_s5 }
 0x393   : > { %v1134_v53 = vsel %vm356_vm3, %v2248_v52, 0.0  ;;  %s1811_s25 = scalar_lea.vmem %s2314_s5, 128 }
 0x394   : > { %1135 = vadd.xlane.f32.xlu1 %v1134_v53  ;;  %p1812_p11 = scmp.ne.s32.totalorder %s2314_s5, %s1811_s25 }
 0x396   : > { %1030 = vrot.lane.b32.xlu0 %v2140_v6, %s1910_s6  ;;  %p1813_p1 = pnand %p1812_p11, %p2375_p0 }
 0x398   : > { %p1814_p3 = pneg %p1813_p1 }
 0x39a   : > { %1140 = vrot.lane.b32.xlu0 %v2140_v6, %s1911_s26 }
 0x3a5   : > { %810 = vrot.lane.b32.xlu1 %v2140_v6, %s1912_s10  ;;  %s2312_s10 = scalar_lea.hbm %s2361_s4, %s1435_s27 }
 0x3c4   : > { %v365_v54 = vpop.xlane.xlu0 %364 }
 0x3c5   : > { %1709 = vrcp.f32 %v365_v54 }
 0x3cc   : > { %v476_v56 = vpop.xlane.xlu1 %475 }
 0x3cd   : > { %1711 = vrcp.f32 %v476_v56  ;;  %v1691_v56 = vld [vmem:[#allocation7] sm:$0xff]  }
 0x3ce   : > { %1581 = vmatpush3.bf16.msra.mxu1 %v1691_v56 }
 0x3cf   : > { %v1710_v57 = vpop.eup %1709  ;;  %1582 = vmatprep.subr.bf16.mxu1 %v1888_v0 }
 0x3d0   : > { %v367_v58 = vmul.f32 %v1710_v57, %v2215_v17 }
 0x3d2   : > { %v368_v59 = vpack.c.bf16 %v367_v58, %v367_v58 }
 0x3d4   : > { %1493 = vmatmul.mubr.msk.bf16.vlgmr.msra.gmra.mrb[4].mxu0 %vm356_vm3, %v368_v59  ;;  %v586_v61 = vpop.xlane.xlu0 %585 }
 0x3d5   : > { %1503 = vmatpush3.bf16.msra.mxu0 %v486_v60  ;;  %1713 = vrcp.f32 %v586_v61  ;;  %1504 = vmatprep.mubr.msk.bf16.mxu0 %vm1889_vm0, %v1888_v0  ;;  %v1692_v61 = vld [vmem:[#allocation7 + $0x8] sm:$0xff]  }
 0x3d6   : > { %1514 = vmatprep.subr.bf16.mxu0 %v1888_v0  ;;  %1583 = vmatpush3.bf16.msra.mxu1 %v1692_v61 }
 0x3d7   : > { %v1712_v6 = vpop.eup %1711 }
 0x3d8   : > { %v478_v62 = vmul.f32 %v1712_v6, %v2219_v22  ;;  %v701_v5 = vpop.permute.xlu0 %700 }
 0x3d9   : > { %v706_v8 = vsel %vm374_vm4, %v701_v5, 0 }
 0x3da   : > { %v479_v63 = vpack.c.bf16 %v478_v62, %v478_v62 }
 0x3dc   : > { %v696_v2 = vpop.xlane.xlu1 %695  ;;  %1505 = vmatmul.mubr.msk.bf16.vlgmr.msra.gmra.mrb[8].mxu0 %vm356_vm3, %v479_v63 }
 0x3dd   : > { %1715 = vrcp.f32 %v696_v2  ;;  %1515 = vmatpush3.bf16.msra.mxu0 %v596_v1  ;;  %1516 = vmatprep.mubr.msk.bf16.mxu0 %vm1889_vm0, %v1888_v0 }
 0x3de   : > { %1526 = vmatprep.subr.bf16.mxu0 %v1888_v0 }
 0x3df   : > { %v1714_v3 = vpop.eup %1713 }
 0x3e0   : > { %v588_v4 = vmul.f32 %v1714_v3, %v2223_v27 }
 0x3e2   : > { %v589_v7 = vpack.c.bf16 %v588_v4, %v588_v4 }
 0x3e4   : > { %1517 = vmatmul.mubr.msk.bf16.vlgmr.msra.gmra.mrb[12].mxu0 %vm356_vm3, %v589_v7  ;;  %v806_v12 = vpop.xlane.xlu1 %805 }
 0x3e5   : > { %1527 = vmatpush3.bf16.msra.mxu0 %v706_v8  ;;  %1528 = vmatprep.mubr.msk.bf16.mxu0 %vm1889_vm0, %v1888_v0  ;;  %1717 = vrcp.f32 %v806_v12 }
 0x3e6   : > { %1538 = vmatprep.subr.bf16.mxu0 %v1888_v0 }
 0x3e7   : > { %v1716_v9 = vpop.eup %1715 }
 0x3e8   : > { %v698_v10 = vmul.f32 %v1716_v9, %v2227_v32 }
 0x3ea   : > { %v699_v11 = vpack.c.bf16 %v698_v10, %v698_v10 }
 0x3ec   : > { %1529 = vmatmul.mubr.msk.bf16.vlgmr.msra.gmra.mrb[16].mxu0 %vm356_vm3, %v699_v11 }
 0x3ed   : > { %1540 = vmatprep.mubr.msk.bf16.mxu0 %vm1889_vm0, %v1888_v0 }
 0x3ef   : > { %v1718_v15 = vpop.eup %1717 }
 0x3f0   : > { %v808_v17 = vmul.f32 %v1718_v15, %v2231_v34 }
 0x3f2   : > { %v809_v21 = vpack.c.bf16 %v808_v17, %v808_v17 }
 0x3f4   : > { %v1026_v14 = vpop.xlane.xlu1 %1025 }
 0x409   : > { %v916_v13 = vpop.xlane.xlu0 %915 }
 0x40a   : > { %1719 = vrcp.f32 %v916_v13 }
 0x40b   : > { %1721 = vrcp.f32 %v1026_v14 }
 0x40d   : > { %v921_v20 = vpop.permute.xlu0 %920 }
 0x40e   : > { %v926_v23 = vsel %vm374_vm4, %v921_v20, 0 }
 0x411   : > { %v1031_v25 = vpop.permute.xlu0 %1030 }
 0x412   : > { %v1036_v28 = vsel %vm374_vm4, %v1031_v25, 0 }
 0x414   : > { %v1720_v22 = vpop.eup %1719 }
 0x415   : > { %v918_v24 = vmul.f32 %v1720_v22, %v2243_v46  ;;  %v1722_v27 = vpop.eup %1721  ;;  %v1141_v30 = vpop.permute.xlu0 %1140 }
 0x416   : > { %v1028_v29 = vmul.f32 %v1722_v27, %v2238_v42  ;;  %v1146_v33 = vsel %vm374_vm4, %v1141_v30, 0 }
 0x417   : > { %v919_v26 = vpack.c.bf16 %v918_v24, %v918_v24 }
 0x418   : > { %v1029_v31 = vpack.c.bf16 %v1028_v29, %v1028_v29 }
 0x421   : > { %v1136_v16 = vpop.xlane.xlu1 %1135 }
 0x422   : > { %1723 = vrcp.f32 %v1136_v16 }
 0x425   : > { %v811_v18 = vpop.permute.xlu1 %810 }
 0x426   : > { %v816_v19 = vsel %vm374_vm4, %v811_v18, 0 }
 0x427   : > { %1539 = vmatpush3.bf16.msra.mxu0 %v816_v19 }
 0x428   : > { %1550 = vmatprep.subr.bf16.mxu0 %v1888_v0 }
 0x42a   : > { %1541 = vmatmul.mubr.msk.bf16.vlgmr.msra.gmra.mrb[20].mxu0 %vm356_vm3, %v809_v21  ;;  %v1430_v21 = vld [vmem:[%s2360_s3] ss:$0 sm:$0xff] }
 0x42b   : > { %1551 = vmatpush3.bf16.msra.mxu0 %v926_v23  ;;  %1552 = vmatprep.mubr.msk.bf16.mxu0 %vm1889_vm0, %v1888_v0 }
 0x42c   : > { %1562 = vmatprep.subr.bf16.mxu0 %v1888_v0  ;;  %v1724_v32 = vpop.eup %1723 }
 0x42d   : > { %v1138_v34 = vmul.f32 %v1724_v32, %v2248_v52 }
 0x42f   : > { %v1139_v35 = vpack.c.bf16 %v1138_v34, %v1138_v34 }
 0x432   : > { %1553 = vmatmul.mubr.msk.bf16.vlgmr.msra.gmra.mrb[24].mxu0 %vm356_vm3, %v919_v26 }
 0x433   : > { %1563 = vmatpush3.bf16.msra.mxu0 %v1036_v28  ;;  %1564 = vmatprep.mubr.msk.bf16.mxu0 %vm1889_vm0, %v1888_v0 }
 0x434   : > { %1574 = vmatprep.subr.bf16.mxu0 %v1888_v0 }
 0x43a   : > { %1565 = vmatmul.mubr.msk.bf16.vlgmr.msra.gmra.mrb[28].mxu0 %vm356_vm3, %v1029_v31 }
 0x43b   : > { %1575 = vmatpush3.bf16.msra.mxu0 %v1146_v33  ;;  %1576 = vmatprep.mubr.msk.bf16.mxu0 %vm1889_vm0, %v1888_v0 }
 0x442   : > { %1577 = vmatmul.mubr.msk.bf16.vlgmr.msra.gmra.mrb[32].mxu0 %vm356_vm3, %v1139_v35 }
 0x4a7   : > { %v412_v36 = vpop.f32.mrb[4].mxu0 }
 0x4a8   : > { %v1494_v37 = vpop.f32.mrb[5].mxu0 }
 0x4a9   : > { %v415_v38 = vpop.f32.mrb[6].mxu0 }
 0x4aa   : > { %v1495_v39 = vpop.f32.mrb[7].mxu0 }
 0x4af   : > { %v522_v40 = vpop.f32.mrb[8].mxu0 }
 0x4b0   : > { %1189 = vrot.lane.b32.xlu1 %v522_v40, %s1913_s24  ;;  %v1506_v41 = vpop.f32.mrb[9].mxu0  ;;  %s1920_s24 = smov [#allocation8]  }
 0x4b1   : > { %v525_v42 = vpop.f32.mrb[10].mxu0 }
 0x4b2   : > { %v1507_v43 = vpop.f32.mrb[11].mxu0 }
 0x4b7   : > { %v632_v44 = vpop.f32.mrb[12].mxu0 }
 0x4b8   : > { %1193 = vrot.lane.b32.xlu0 %v632_v44, %s1914_s20  ;;  %v1518_v45 = vpop.f32.mrb[13].mxu0  ;;  %s1815_s20 = sshll.u32 %s1920_s24, 4  ;;  %s1816_s20 = int_to_ptr.vmem [resolvable:$false] %s1815_s20 }
 0x4b9   : > { %v635_v46 = vpop.f32.mrb[14].mxu0  ;;  %p1818_p7 = scmp.lt.s32.totalorder %s2314_s5, %s1816_s20 }
 0x4ba   : > { %v1519_v47 = vpop.f32.mrb[15].mxu0 }
 0x4bf   : > { %v742_v48 = vpop.f32.mrb[16].mxu0 }
 0x4c0   : > { %1197 = vrot.lane.b32.xlu1 %v742_v48, %s1915_s28  ;;  %v1530_v49 = vpop.f32.mrb[17].mxu0  ;;  %s1817_s28 = scalar_lea.vmem %s1816_s20, 256 }
 0x4c1   : > { %v745_v50 = vpop.f32.mrb[18].mxu0  ;;  %p1819_p9 = scmp.lt.s32.totalorder %s1817_s28, %s1811_s25 }
 0x4c2   : > { %v1531_v51 = vpop.f32.mrb[19].mxu0 }
 0x4c3   : > { %p1820_p12 = por %p1819_p9, %p1818_p7 }
 0x4c5   : > { %p1821_p2 = pnand %p1820_p12, %p1814_p3 }
 0x4fd   : > { %v852_v52 = vpop.f32.mrb[20].mxu0 }
 0x4fe   : > { %1201 = vrot.lane.b32.xlu0 %v852_v52, %s1916_s11  ;;  %v1542_v53 = vpop.f32.mrb[21].mxu0 }
 0x4ff   : > { %v855_v54 = vpop.f32.mrb[22].mxu0 }
 0x500   : > { %v1543_v55 = vpop.f32.mrb[23].mxu0 }
 0x505   : > { %v962_v57 = vpop.f32.mrb[24].mxu0 }
 0x506   : > { %1205 = vrot.lane.b32.xlu1 %v962_v57, %s1917_s12  ;;  %v1554_v58 = vpop.f32.mrb[25].mxu0 }
 0x507   : > { %v965_v59 = vpop.f32.mrb[26].mxu0 }
 0x508   : > { %v1555_v60 = vpop.f32.mrb[27].mxu0 }
 0x50d   : > { %v1072_v6 = vpop.f32.mrb[28].mxu0 }
 0x50e   : > { %1209 = vrot.lane.b32.xlu0 %v1072_v6, %s1918_s7  ;;  %v1566_v62 = vpop.f32.mrb[29].mxu0 }
 0x50f   : > { %v1075_v63 = vpop.f32.mrb[30].mxu0 }
 0x510   : > { %v1567_v1 = vpop.f32.mrb[31].mxu0 }
 0x515   : > { %v1182_v2 = vpop.f32.mrb[32].mxu0 }
 0x516   : > { %1213 = vrot.lane.b32.xlu1 %v1182_v2, %s1919_s8  ;;  %v1578_v3 = vpop.f32.mrb[33].mxu0 }
 0x517   : > { %v1185_v4 = vpop.f32.mrb[34].mxu0 }
 0x518   : > { %v1579_v0 = vpop.f32.mrb[35].mxu0 }
 0x522   : > { %v1190_v5 = vpop.permute.xlu1 %1189 }
 0x523   : > { %v1216_v10 = vsel %vm309_vm2, %v412_v36, %v1190_v5 }
 0x52a   : > { %v1194_v7 = vpop.permute.xlu0 %1193 }
 0x52b   : > { %v1217_v11 = vsel %vm356_vm3, %v1216_v10, %v1194_v7 }
 0x532   : > { %v1198_v8 = vpop.permute.xlu1 %1197 }
 0x533   : > { %v1219_v13 = vsel %vm1218_vm5, %v1217_v11, %v1198_v8 }
 0x570   : > { %v1202_v9 = vpop.permute.xlu0 %1201 }
 0x571   : > { %v1221_v15 = vsel %vm1220_vm6, %v1219_v13, %v1202_v9 }
 0x578   : > { %v1206_v12 = vpop.permute.xlu1 %1205 }
 0x579   : > { %v1223_v16 = vsel %vm1222_vm7, %v1221_v15, %v1206_v12 }
 0x580   : > { %v1210_v14 = vpop.permute.xlu0 %1209 }
 0x581   : > { %v1225_v17 = vsel %vm1224_vm8, %v1223_v16, %v1210_v14 }
 0x588   : > { %v1214_v18 = vpop.permute.xlu1 %1213 }
 0x589   : > { %v1227_v19 = vsel %vm1226_vm9, %v1225_v17, %v1214_v18 }
 0x58a   : > { %v1228_v20 = vpack.c.bf16 %v1227_v19, %v1227_v19 }
 0x58c   : > { %1585 = vmatmul.mubr.msk.bf16.vlgmr.msra.gmra.mrb[32].mxu1 %vm261_vm1, %v1228_v20 }
 0x65f   : > { %v1289_v22 = vpop.f32.mrb[32].mxu1 }
 0x660   : > { %v1290_v23 = vadd.f32 %v1430_v21, %v1289_v22  ;;  %v1586_v24 = vpop.f32.mrb[33].mxu1 }
 0x661   : > { %v1292_v25 = vpop.f32.mrb[34].mxu1 }
 0x662   : > { %v1587_v26 = vpop.f32.mrb[35].mxu1  ;;  %1295 = vst.msk [vmem:[%s241_s30] sm:$0xff] %vm261_vm1, %v1290_v23 }
 0x663   : > { %1824 = shalt.err (!%p1821_p2)
}
 0x664   : > { %s1825_s29 = scalar_lea.hbm %s2312_s10, 128  ;;  %s1829_s7 = scalar_lea.hbm %s2361_s4, 256 }
 0x665   : > { %p1826_p13 = scmp.ne.s32.totalorder %s2312_s10, %s1825_s29  ;;  %p1830_p4 = scmp.lt.u32.totalorder %s2312_s10, %s2361_s4 }
 0x666   : > { %p1831_p5 = scmp.lt.u32.totalorder %s1829_s7, %s1825_s29  ;;  %p1833_p11 = scmp.lt.u32.totalorder %s1825_s29, %s2312_s10 }
 0x667   : > { %p1827_p6 = pnand %p1826_p13, %p2375_p0 }
 0x668   : > { %p1832_p8 = por %p1831_p5, %p1830_p4 }
 0x669   : > { %p1828_p10 = pneg %p1827_p6 }
 0x66a   : > { %p1834_p1 = por %p1833_p11, %p1832_p8 }
 0x66c   : > { %p1835_p3 = pnand %p1834_p1, %p1828_p10 }
 0x66e   : > { %1838 = shalt.err (!%p1835_p3)
}
 0x66f   : > { %1598 = dma.vmem_to_hbm [thread:$0]  (%p2375_p0), %s2314_s5, 128, %s2312_s10, %s1297_s19  }
 0x670 PF: > { %s1322_s23 = sand.u32 1, %s1869_s15   ;;  %p2376_p7 = scmp.ne.s32.totalorder %s2366_s22, 0 }
 0x671   : > { %p2377_p9 = scmp.ge.s32.totalorder %s1881_s18, 2  ;;  %s1323_s27 = scalar_lea.sflag [#allocation4], %s1322_s23 }
 0x673   : > { %p1612_p12 = pnand %p2377_p9, %p2376_p7 }
 0x675   : > { %1864 = dma.done.wait (!%p1612_p12), %s1323_s27, 128  }
 0x676   : > { %1866 = vsyncadd (!%p1612_p12), %s1323_s27, 4294967168  ;;  %p18_p2 = scmp.ge.s32.totalorder %s2056_s9, 4   ;;  %s2378_s15 = smov %s1873_s16 }
 0x677   : > { %s2379_s16 = smov %s1877_s17  ;;  %s2380_s17 = smov %s2072_s14 }
 0x678   : > { %s2381_s18 = smov %s2056_s9  ;;  %20 = sbr.rel (!%p18_p2) target bundleno = 6 (0x6), region = 89 }
 0x67f   :  { %1328 = vsyncpa [#allocation3], 1 }
 0x680   :  { %1330 = vsyncpa [#allocation3 + $0x1], 1 }
 0x681   :  { %1331 = vsyncpa [#allocation6], 1 }
 0x682   :  { %1332 = vsyncpa [#allocation4], 1 }
 0x683   :  { %1334 = vsyncpa [#allocation4 + $0x1], 1 }

</bundles_post_ra>
